<compile_context>
chip_gen: v7x
topology: tpu7x:2x2x1
jax: 0.10.0
libtpu: 0.0.40
codegen_flags: <defaults>
</compile_context>

<pallas_src>
import functools

import jax
import jax.numpy as jnp
from jax.experimental import pallas as pl
from jax.experimental.pallas import tpu as pltpu

_LANE = 128
_SUBLANE = 8
_TARGET_TB = 512   # sweep 512-1024; 512-row tiles already reach ~85% of HBM roofline


def _ceil_to(x, m):
    return ((x + m - 1) // m) * m


def _mxu_pad(d):
    # 128-lane padding normally; once a dim can fill v6e/v7x's 256-wide MXU,
    # pad to 256 so each MXU pass uses the full array.
    return _ceil_to(d, 256 if d >= 256 else _LANE)


def _pad2d(a, rows, cols):
    r, c = a.shape
    return jnp.pad(a, ((0, rows - r), (0, cols - c)))


def _vmem_capacity_bytes():
    """Generation-aware VMEM capacity; falls back to v7x's 64 MiB per TC."""
    try:
        cap = getattr(pltpu.get_tpu_info(), "vmem_capacity_bytes", None)
        if cap:
            return int(cap)
    except Exception:
        pass
    return 64 << 20


def _pick_batch_tile(batch):
    """Rows per grid step.

    Large tiles amortize the ~0.35 us per-step overhead; once batch >= 128 we
    keep >=2 roughly balanced steps so the "parallel" batch axis can shard
    across v7x's two TensorCores (harmless on single-TC v5e/v6e).
    """
    if batch < 16 * _SUBLANE:                       # tiny batch -> single step
        return max(_ceil_to(batch, _SUBLANE), _SUBLANE)
    n_steps = max(2, pl.cdiv(batch, _TARGET_TB))
    return _ceil_to(pl.cdiv(batch, n_steps), _SUBLANE)


def _cdefunc_kernel(num_hidden, hu_pad, out_dim, z_ref, w_in_ref, *rest):
    """All layers fused: matmuls on the MXU (bf16 in / f32 acc), ReLU on the
    VPU, tanh on the EUP. Weights/biases are VMEM-resident across batch tiles.

    rest = ([w_hid_ref if num_hidden > 0], w_out_ref, b_ref, out_ref)
    """
    if num_hidden > 0:
        w_hid_ref = rest[0]
        rest = rest[1:]
    w_out_ref, b_ref, out_ref = rest

    # linear_in + ReLU  (K = HC, unpadded; Mosaic handles the short contraction)
    x = z_ref[...].astype(jnp.bfloat16)
    h = jnp.dot(x, w_in_ref[...], preferred_element_type=jnp.float32)
    h = jnp.maximum(h + b_ref[0:1, :hu_pad], 0.0)

    # sequential: (num_hidden_layers - 1) x [Linear(HU, HU) + ReLU]
    for l in range(num_hidden):
        h = jnp.dot(h.astype(jnp.bfloat16), w_hid_ref[l],
                    preferred_element_type=jnp.float32)
        h = jnp.maximum(h + b_ref[l + 1:l + 2, :hu_pad], 0.0)

    # linear_out + tanh  (N = IC*HC, unpadded -> masked vst but half the writeback)
    y = jnp.dot(h.astype(jnp.bfloat16), w_out_ref[...],
                preferred_element_type=jnp.float32)
    y = y + b_ref[num_hidden + 1:num_hidden + 2, :out_dim]
    out_ref[...] = jnp.tanh(y).astype(out_ref.dtype)

    # TODO(synk): layer_norm=False path only (module default). A LayerNorm branch
    # must mask the zero-padded HU columns (and any ragged batch rows) out of the
    # per-row mean/var reductions.


def pack_params(params, hidden_channels, input_channels):
    """Pad params to MXU-friendly shapes, cast weights to bf16, stack biases.
    Call once per parameter set; reuse across ODE vector-field evaluations."""
    w_in, b_in = params["w_in"], params["b_in"]
    hidden = params["hidden"]
    w_out, b_out = params["w_out"], params["b_out"]

    hc, hu = w_in.shape
    out_dim = w_out.shape[1]
    assert out_dim == hidden_channels * input_channels

    hu_pad = _mxu_pad(hu)
    max_pad = max(hu_pad, _ceil_to(out_dim, _LANE))
    nh = len(hidden)
    nl = nh + 2

    # z feature dim (HC) and the output dim (IC*HC) are left UNPADDED so
    # activation HBM traffic is not inflated; only HU (weights/intermediates,
    # VMEM-resident) is padded. Zero rows/cols keep the numerics exact.
    w_in_p = _pad2d(w_in, hc, hu_pad).astype(jnp.bfloat16)
    w_out_p = _pad2d(w_out, hu_pad, out_dim).astype(jnp.bfloat16)
    w_hid_p = None
    if nh > 0:
        w_hid_p = jnp.stack(
            [_pad2d(w, hu_pad, hu_pad).astype(jnp.bfloat16) for w, _ in hidden])

    biases = jnp.zeros((nl, max_pad), jnp.float32)
    biases = biases.at[0, :hu].set(b_in.reshape(-1).astype(jnp.float32))
    for l, (_, b) in enumerate(hidden):
        biases = biases.at[l + 1, :hu].set(b.reshape(-1).astype(jnp.float32))
    biases = biases.at[nl - 1, :out_dim].set(b_out.reshape(-1).astype(jnp.float32))

    return {
        "w_in": w_in_p, "w_hid": w_hid_p, "w_out": w_out_p, "biases": biases,
        "dims": (hc, hu, out_dim, hu_pad, max_pad, nh),
    }


def cde_func_forward(t, z, packed, hidden_channels, input_channels):
    """Pallas equivalent of CDEFunc.forward(t, z). `t` is unused (as in torch)."""
    del t
    batch, hc_in = z.shape
    hc, hu, out_dim, hu_pad, max_pad, nh = packed["dims"]
    assert hc_in == hc == hidden_channels
    assert out_dim == hidden_channels * input_channels

    tb = _pick_batch_tile(batch)
    grid = (pl.cdiv(batch, tb),)   # ragged last block is masked by Pallas

    const2 = lambda i: (0, 0)
    in_specs = [pl.BlockSpec((tb, hc), lambda i: (i, 0)),      # z: unpadded features
                pl.BlockSpec((hc, hu_pad), const2)]            # weights: resident
    inputs = [z, packed["w_in"]]
    if nh > 0:
        in_specs.append(pl.BlockSpec((nh, hu_pad, hu_pad), lambda i: (0, 0, 0)))
        inputs.append(packed["w_hid"])
    nl = nh + 2
    in_specs += [pl.BlockSpec((hu_pad, out_dim), const2),
                 pl.BlockSpec((nl, max_pad), const2)]
    inputs += [packed["w_out"], packed["biases"]]

    # Generation-aware VMEM budget: double-buffered activations + resident
    # weights + kernel intermediates (f32 h/y + bf16 MXU copies), clamped to
    # 75% of this chip's VMEM (64 MiB fallback = v7x per-TC).
    def nbytes(a):
        return int(a.size) * a.dtype.itemsize
    weight_bytes = sum(nbytes(a) for a in inputs[1:])
    act_bytes = tb * hc * z.dtype.itemsize + tb * out_dim * z.dtype.itemsize
    inter_bytes = tb * (hu_pad + out_dim) * 6
    vmem_needed = 2 * act_bytes + 2 * weight_bytes + inter_bytes + (2 << 20)
    vmem_limit = int(min(_vmem_capacity_bytes() * 3 // 4,
                         max(vmem_needed, 32 << 20)))
    # TODO(synk): if HU or IC*HC grows so resident weights approach the budget,
    # tile w_out over its N dimension and/or single-buffer the constant-index
    # weight specs (pipeline_mode=pl.Buffered(1)); at <0.2 MiB of weights the
    # default double-buffering is negligible today.

    flops = 2 * batch * (hc * hu + nh * hu * hu + hu * out_dim)
    cost = pl.CostEstimate(
        flops=flops,
        transcendentals=batch * out_dim,
        bytes_accessed=nbytes(z) + weight_bytes + batch * out_dim * z.dtype.itemsize)

    out2d = pl.pallas_call(
        functools.partial(_cdefunc_kernel, nh, hu_pad, out_dim),
        grid=grid,
        in_specs=in_specs,
        out_specs=pl.BlockSpec((tb, out_dim), lambda i: (i, 0)),
        out_shape=jax.ShapeDtypeStruct((batch, out_dim), z.dtype),
        compiler_params=pltpu.CompilerParams(
            dimension_semantics=("parallel",),
            vmem_limit_bytes=vmem_limit),
        cost_estimate=cost,
    )(*inputs)

    # Contiguous reshape only (no slice copy); same semantics as torch's
    # z.view(B, HC, IC) after tanh.
    return out2d.reshape(batch, hidden_channels, input_channels)


def init_params(key, input_channels, hidden_channels, hidden_units,
                num_hidden_layers, dtype=jnp.float32):
    """Deterministic init mimicking torch.nn.Linear defaults (U[-1/sqrt(fan_in), ..])."""
    def linear(k, fan_in, fan_out):
        k_w, k_b = jax.random.split(k)
        bound = 1.0 / jnp.sqrt(fan_in)
        w = jax.random.uniform(k_w, (fan_in, fan_out), dtype, -bound, bound)
        b = jax.random.uniform(k_b, (1, fan_out), dtype, -bound, bound)
        return w, b

    keys = jax.random.split(key, num_hidden_layers + 1)
    w_in, b_in = linear(keys[0], hidden_channels, hidden_units)
    hidden = []
    for l in range(num_hidden_layers - 1):
        hidden.append(linear(keys[1 + l], hidden_units, hidden_units))
    w_out, b_out = linear(keys[-1], hidden_units, input_channels * hidden_channels)
    return {"w_in": w_in, "b_in": b_in, "hidden": hidden,
            "w_out": w_out, "b_out": b_out}


def cde_func_reference(z, params):
    """Pure-JAX f32 reference of the torch forward (pre-reshape)."""
    h = jnp.maximum(z @ params["w_in"] + params["b_in"], 0.0)
    for w, b in params["hidden"]:
        h = jnp.maximum(h @ w + b, 0.0)
    y = h @ params["w_out"] + params["b_out"]
    return jnp.tanh(y)


if __name__ == "__main__":
    # Small shapes consistent with the module's forward.
    batch = 8
    input_channels = 4
    hidden_channels = 16
    hidden_units = 32
    num_hidden_layers = 3   # -> 2 Linear+ReLU blocks inside `sequential`

    key = jax.random.PRNGKey(0)
    k_z, k_p = jax.random.split(key)
    z = jax.random.normal(k_z, (batch, hidden_channels), jnp.float32)
    t = jnp.float32(0.0)    # unused, as in CDEFunc.forward
    params = init_params(k_p, input_channels, hidden_channels, hidden_units,
                         num_hidden_layers)
    packed = pack_params(params, hidden_channels, input_channels)

    out = cde_func_forward(t, z, packed, hidden_channels, input_channels)
    out = jax.block_until_ready(out)

    assert out.shape == (batch, hidden_channels, input_channels), out.shape
    assert bool(jnp.all(jnp.isfinite(out)))
    assert bool(jnp.all(jnp.abs(out) <= 1.0))   # tanh-bounded

    # Loose tolerance: kernel uses bf16 MXU inputs with f32 accumulation.
    ref = cde_func_reference(z, params).reshape(
        batch, hidden_channels, input_channels)
    err = float(jnp.max(jnp.abs(out - ref)))
    assert err < 5e-2, f"max abs err vs f32 reference: {err}"

    print("KERNEL_OK")
</pallas_src>

<mosaic_0001>
module attributes {stable_mosaic.version = 11 : i64} {
  func.func @_cdefunc_kernel(%arg0: i32, %arg1: memref<8x16xf32, #tpu.memory_space<vmem>>, %arg2: memref<16x128xbf16, #tpu.memory_space<vmem>>, %arg3: memref<2x128x128xbf16, #tpu.memory_space<vmem>>, %arg4: memref<128x64xbf16, #tpu.memory_space<vmem>>, %arg5: memref<4x128xf32, #tpu.memory_space<vmem>>, %arg6: memref<8x64xf32, #tpu.memory_space<vmem>>) attributes {dimension_semantics = [#tpu.dimension_semantics<parallel>], iteration_bounds = array<i64: 1>, scalar_prefetch = 0 : i64, scratch_operands = 0 : i64, tpu.core_type = #tpu.core_type<tc>, window_params = [{transform_indices = @transform_0, window_bounds = array<i64: 8, 16>}, {pipeline_mode = #tpu.pipeline_mode<synchronous>, transform_indices = @transform_1, window_bounds = array<i64: 16, 128>}, {pipeline_mode = #tpu.pipeline_mode<synchronous>, transform_indices = @transform_2, window_bounds = array<i64: 2, 128, 128>}, {pipeline_mode = #tpu.pipeline_mode<synchronous>, transform_indices = @transform_3, window_bounds = array<i64: 128, 64>}, {pipeline_mode = #tpu.pipeline_mode<synchronous>, transform_indices = @transform_4, window_bounds = array<i64: 4, 128>}, {transform_indices = @transform_5, window_bounds = array<i64: 8, 64>}]} {
    %c0 = arith.constant 0 : index
    %c0_0 = arith.constant 0 : index
    %0 = vector.load %arg1[%c0, %c0_0] : memref<8x16xf32, #tpu.memory_space<vmem>>, vector<8x16xf32>
    %1 = arith.truncf %0 : vector<8x16xf32> to vector<8x16xbf16>
    %c0_1 = arith.constant 0 : index
    %c0_2 = arith.constant 0 : index
    %2 = vector.load %arg2[%c0_1, %c0_2] : memref<16x128xbf16, #tpu.memory_space<vmem>>, vector<16x128xbf16>
    %cst = arith.constant dense<0.000000e+00> : vector<8x128xf32>
    %3 = tpu.matmul %1, %2, %cst {dimension_numbers = #tpu.dot_dimension_numbers<[1], [0], [0], [1], [0, 0, 1, 1], [], []>} : vector<8x16xbf16>, vector<16x128xbf16>, vector<8x128xf32> -> vector<8x128xf32>
    %c0_3 = arith.constant 0 : index
    %c0_4 = arith.constant 0 : index
    %4 = vector.load %arg5[%c0_3, %c0_4] : memref<4x128xf32, #tpu.memory_space<vmem>>, vector<1x128xf32>
    %5 = vector.broadcast %4 : vector<1x128xf32> to vector<8x128xf32>
    %6 = arith.addf %3, %5 : vector<8x128xf32>
    %cst_5 = arith.constant 0.000000e+00 : f32
    %7 = vector.broadcast %cst_5 : f32 to vector<8x128xf32>
    %8 = arith.maximumf %6, %7 : vector<8x128xf32>
    %9 = arith.truncf %8 : vector<8x128xf32> to vector<8x128xbf16>
    %c0_6 = arith.constant 0 : index
    %c0_7 = arith.constant 0 : index
    %c0_8 = arith.constant 0 : index
    %10 = vector.load %arg3[%c0_6, %c0_7, %c0_8] : memref<2x128x128xbf16, #tpu.memory_space<vmem>>, vector<1x128x128xbf16>
    %11 = vector.shape_cast %10 : vector<1x128x128xbf16> to vector<128x128xbf16>
    %cst_9 = arith.constant dense<0.000000e+00> : vector<8x128xf32>
    %12 = tpu.matmul %9, %11, %cst_9 {dimension_numbers = #tpu.dot_dimension_numbers<[1], [0], [0], [1], [0, 0, 1, 1], [], []>} : vector<8x128xbf16>, vector<128x128xbf16>, vector<8x128xf32> -> vector<8x128xf32>
    %c1 = arith.constant 1 : index
    %c0_10 = arith.constant 0 : index
    %13 = vector.load %arg5[%c1, %c0_10] : memref<4x128xf32, #tpu.memory_space<vmem>>, vector<1x128xf32>
    %14 = vector.broadcast %13 : vector<1x128xf32> to vector<8x128xf32>
    %15 = arith.addf %12, %14 : vector<8x128xf32>
    %cst_11 = arith.constant 0.000000e+00 : f32
    %16 = vector.broadcast %cst_11 : f32 to vector<8x128xf32>
    %17 = arith.maximumf %15, %16 : vector<8x128xf32>
    %18 = arith.truncf %17 : vector<8x128xf32> to vector<8x128xbf16>
    %c1_12 = arith.constant 1 : index
    %c0_13 = arith.constant 0 : index
    %c0_14 = arith.constant 0 : index
    %19 = vector.load %arg3[%c1_12, %c0_13, %c0_14] : memref<2x128x128xbf16, #tpu.memory_space<vmem>>, vector<1x128x128xbf16>
    %20 = vector.shape_cast %19 : vector<1x128x128xbf16> to vector<128x128xbf16>
    %cst_15 = arith.constant dense<0.000000e+00> : vector<8x128xf32>
    %21 = tpu.matmul %18, %20, %cst_15 {dimension_numbers = #tpu.dot_dimension_numbers<[1], [0], [0], [1], [0, 0, 1, 1], [], []>} : vector<8x128xbf16>, vector<128x128xbf16>, vector<8x128xf32> -> vector<8x128xf32>
    %c2 = arith.constant 2 : index
    %c0_16 = arith.constant 0 : index
    %22 = vector.load %arg5[%c2, %c0_16] : memref<4x128xf32, #tpu.memory_space<vmem>>, vector<1x128xf32>
    %23 = vector.broadcast %22 : vector<1x128xf32> to vector<8x128xf32>
    %24 = arith.addf %21, %23 : vector<8x128xf32>
    %cst_17 = arith.constant 0.000000e+00 : f32
    %25 = vector.broadcast %cst_17 : f32 to vector<8x128xf32>
    %26 = arith.maximumf %24, %25 : vector<8x128xf32>
    %27 = arith.truncf %26 : vector<8x128xf32> to vector<8x128xbf16>
    %c0_18 = arith.constant 0 : index
    %c0_19 = arith.constant 0 : index
    %28 = vector.load %arg4[%c0_18, %c0_19] : memref<128x64xbf16, #tpu.memory_space<vmem>>, vector<128x64xbf16>
    %cst_20 = arith.constant dense<0.000000e+00> : vector<8x64xf32>
    %29 = tpu.matmul %27, %28, %cst_20 {dimension_numbers = #tpu.dot_dimension_numbers<[1], [0], [0], [1], [0, 0, 1, 1], [], []>} : vector<8x128xbf16>, vector<128x64xbf16>, vector<8x64xf32> -> vector<8x64xf32>
    %c3 = arith.constant 3 : index
    %c0_21 = arith.constant 0 : index
    %30 = vector.load %arg5[%c3, %c0_21] : memref<4x128xf32, #tpu.memory_space<vmem>>, vector<1x64xf32>
    %31 = vector.broadcast %30 : vector<1x64xf32> to vector<8x64xf32>
    %32 = arith.addf %29, %31 : vector<8x64xf32>
    %33 = math.tanh %32 : vector<8x64xf32>
    %c0_22 = arith.constant 0 : index
    %c0_23 = arith.constant 0 : index
    %34 = vector.load %arg6[%c0_22, %c0_23] : memref<8x64xf32, #tpu.memory_space<vmem>>, vector<8x64xf32>
    tpu.vector_store %arg6[%c0_22, %c0_23], %33 {strides = array<i32>} : memref<8x64xf32, #tpu.memory_space<vmem>>, vector<8x64xf32>,
    return
  }
  func.func @transform_0(%arg0: i32) -> (i32, i32) {
    %c0_i32 = arith.constant 0 : i32
    %c0_i32_0 = arith.constant 0 : i32
    return %arg0, %c0_i32 : i32, i32
  }
  func.func @transform_1(%arg0: i32) -> (i32, i32) {
    %c0_i32 = arith.constant 0 : i32
    %c0_i32_0 = arith.constant 0 : i32
    %c0_i32_1 = arith.constant 0 : i32
    return %c0_i32, %c0_i32_0 : i32, i32
  }
  func.func @transform_2(%arg0: i32) -> (i32, i32, i32) {
    %c0_i32 = arith.constant 0 : i32
    %c0_i32_0 = arith.constant 0 : i32
    %c0_i32_1 = arith.constant 0 : i32
    %c0_i32_2 = arith.constant 0 : i32
    return %c0_i32, %c0_i32_0, %c0_i32_1 : i32, i32, i32
  }
  func.func @transform_3(%arg0: i32) -> (i32, i32) {
    %c0_i32 = arith.constant 0 : i32
    %c0_i32_0 = arith.constant 0 : i32
    %c0_i32_1 = arith.constant 0 : i32
    return %c0_i32, %c0_i32_0 : i32, i32
  }
  func.func @transform_4(%arg0: i32) -> (i32, i32) {
    %c0_i32 = arith.constant 0 : i32
    %c0_i32_0 = arith.constant 0 : i32
    %c0_i32_1 = arith.constant 0 : i32
    return %c0_i32, %c0_i32_0 : i32, i32
  }
  func.func @transform_5(%arg0: i32) -> (i32, i32) {
    %c0_i32 = arith.constant 0 : i32
    %c0_i32_0 = arith.constant 0 : i32
    return %arg0, %c0_i32 : i32, i32
  }
}

</mosaic_0001>

<bundles_post_ra>
// kernel: tpu_custom_call.1
= control target key start
LH: loop header
LB: loop body
LE: loop exit
PB: predicated region body
PF: predicated region fallthrough
CT: control target
= control target key end

     0   :  { %10 = vsyncpa [#allocation3], 0  ;;  %s788_s0 = inlined_call_operand.vmem [shape: f32[8,16], index: 0, kind: input, shape index: {}]   ;;  %s789_s1 = inlined_call_operand.vmem [shape: bf16[16,128], index: 1, kind: input, shape index: {}]   ;;  %s790_s2 = inlined_call_operand.hbm [shape: bf16[2,128,128], index: 2, kind: input, shape index: {}]   ;;  %s791_s3 = inlined_call_operand.vmem [shape: bf16[128,64], index: 3, kind: input, shape index: {}]   ;;  %s792_s4 = inlined_call_operand.vmem [shape: f32[4,128], index: 4, kind: input, shape index: {}]   ;;  %s793_s5 = inlined_call_operand.hbm [shape: f32[8,64], index: 5, kind: output, shape index: {}]  }
   0x1   :  { %11 = vsyncpa [#allocation4], 0  ;;  %s653_s18 = smov [#allocation2]   ;;  %s605_s22 = scalar_lea.hbm %s790_s2, 2048 }
   0x2   :  { %s21_s19 = sshll.u32 %s653_s18, 4  ;;  %p606_p0 = scmp.ne.s32.totalorder %s790_s2, %s605_s22  ;;  %s22_s19 = int_to_ptr.vmem [resolvable:$true] %s21_s19 }
   0x3   :  { %p609_p1 = scmp.lt.u32.totalorder %s605_s22, %s790_s2 }
   0x5   :  { %p611_p2 = pnand %p609_p1, %p606_p0 }
   0x7   :  { %614 = shalt.err (!%p611_p2)
}
   0x8   :  { %s615_s27 = scalar_lea.vmem %s22_s19, 2048  ;;  %p620_p4 = scmp.lt.s32.totalorder %s22_s19, %s22_s19 }
   0x9   :  { %p616_p3 = scmp.ne.s32.totalorder %s22_s19, %s615_s27  ;;  %p621_p5 = scmp.lt.s32.totalorder %s615_s27, %s615_s27 }
   0xb   :  { %p622_p6 = por %p621_p5, %p620_p4 }
   0xd   :  { %p623_p7 = pnand %p622_p6, %p616_p3 }
   0xf   :  { %626 = shalt.err (!%p623_p7)
}
  0x10   :  { %s654_s28 = smov 64   ;;  %s655_s29 = smov 4  }
  0x11   :  { %27 = dma.hbm_to_vmem [thread:$0]  %s790_s2, 2048, %s22_s19, [#allocation3], %s654_s28, %s654_s28, %s655_s29  }
  0x12   :  { %649 = dma.done.wait [#allocation3], 2048  }
  0x13   :  { %650 = vsyncadd [#allocation3], 4294965248  ;;  %v656_v0 = vmov 0.0   ;;  %vm657_vm0 = vmmov 0   ;;  %v578_v1 = vld [vmem:[%s789_s1] sm:$0xff]   ;;  %vm51_vm1 = vcmask 130048  }
  0x14   :  { %506 = vmatprep.subr.bf16.mxu0 %v656_v0  ;;  %508 = vmatprep.mubr.msk.bf16.mxu0 %vm657_vm0, %v656_v0  ;;  %v36_v2 = vld [vmem:[%s788_s0] sm:$0xff]  ;;  %v580_v5 = vld [vmem:[#allocation2 + $0x8] sm:$0xff]   ;;  %v581_v6 = vld [vmem:[#allocation2 + $0x10] sm:$0xff]   ;;  %vm430_vm2 = vcmask 523264  }
  0x15   :  { %512 = vmatprep.subr.bf16.mxu1 %v656_v0  ;;  %528 = vmatprep.mubr.msk.bf16.mxu1 %vm657_vm0, %v656_v0  ;;  %v37_v3 = vpack.c.bf16 %v36_v2, %v36_v2  ;;  %v579_v4 = vld [vmem:[#allocation2] sm:$0xff]   ;;  %v582_v7 = vld [vmem:[#allocation2 + $0x18] sm:$0xff]   ;;  %v584_v9 = vld [vmem:[#allocation2 + $0x28] sm:$0xff]  }
  0x16   :  { %507 = vmatpush3.bf16.msra.mxu0 %v578_v1  ;;  %513 = vmatpush3.bf16.msra.mxu1 %v579_v4  ;;  %v583_v8 = vld [vmem:[#allocation2 + $0x20] sm:$0xff]   ;;  %v585_v10 = vld [vmem:[#allocation2 + $0x30] sm:$0xff]   ;;  %v586_v11 = vld [vmem:[#allocation2 + $0x38] sm:$0xff]  }
  0x17   :  { %532 = vmatprep.subr.bf16.mxu0 %v656_v0  ;;  %514 = vmatprep.subr.bf16.mxu1 %v656_v0  ;;  %v587_v12 = vld [vmem:[#allocation2 + $0x40] sm:$0xff]   ;;  %v588_v13 = vld [vmem:[#allocation2 + $0x48] sm:$0xff]   ;;  %v589_v14 = vld [vmem:[#allocation2 + $0x50] sm:$0xff]  }
  0x18   :  { %v590_v15 = vld [vmem:[#allocation2 + $0x58] sm:$0xff]   ;;  %v591_v16 = vld [vmem:[#allocation2 + $0x60] sm:$0xff]   ;;  %v592_v17 = vld [vmem:[#allocation2 + $0x68] sm:$0xff]  }
  0x19   :  { %509 = vmatmul.mubr.msk.bf16.vlgmr.msra.gmra.mrb[0].mxu0 %vm51_vm1, %v37_v3  ;;  %v447_v18 = vld [vmem:[%s792_s4] ss:$0 sm:$0xff]  ;;  %v593_v26 = vld [vmem:[#allocation2 + $0x70] sm:$0xff]   ;;  %v594_v27 = vld [vmem:[#allocation2 + $0x78] sm:$0xff]  }
  0x1a   :  { %548 = vmatprep.mubr.msk.bf16.mxu0 %vm657_vm0, %v656_v0  ;;  %515 = vmatpush3.bf16.msra.mxu1 %v580_v5  ;;  %v595_v28 = vld [vmem:[%s791_s3] sm:$0xff]   ;;  %v596_v29 = vld [vmem:[%s791_s3 + $0x8] sm:$0xff]   ;;  %v597_v30 = vld [vmem:[%s791_s3 + $0x10] sm:$0xff]  }
  0x1b   :  { %516 = vmatprep.subr.bf16.mxu1 %v656_v0  ;;  %533 = vmatpush3.bf16.msra.mxu0 %v587_v12  ;;  %v598_v31 = vld [vmem:[%s791_s3 + $0x18] sm:$0xff]   ;;  %v599_v32 = vld [vmem:[%s791_s3 + $0x20] sm:$0xff]   ;;  %v600_v33 = vld [vmem:[%s791_s3 + $0x28] sm:$0xff]  }
  0x1c   :  { %534 = vmatprep.subr.bf16.mxu0 %v656_v0  ;;  %v450_v34 = vld [vmem:[%s792_s4 + $0x1] ss:$0 sm:$0xff]  ;;  %v601_v42 = vld [vmem:[%s791_s3 + $0x30] sm:$0xff]   ;;  %v602_v43 = vld [vmem:[%s791_s3 + $0x38] sm:$0xff]   ;;  %s658_s3 = smov [#allocation5]  }
  0x1d   :  { %v459_v44 = vld [vmem:[%s792_s4 + $0x2] ss:$0 sm:$0xff]  ;;  %v468_v52 = vld [vmem:[%s792_s4 + $0x3] ss:$0 sm:$0xff]  ;;  %s438_s7 = sshll.u32 %s658_s3, 4  ;;  %s439_s7 = int_to_ptr.vmem [resolvable:$true] %s438_s7 }
  0x1e   :  { %517 = vmatpush3.bf16.msra.mxu1 %v581_v6  ;;  %s627_s8 = scalar_lea.vmem %s439_s7, 128  ;;  %p632_p9 = scmp.lt.s32.totalorder %s439_s7, %s439_s7 }
  0x1f   :  { %518 = vmatprep.subr.bf16.mxu1 %v656_v0  ;;  %535 = vmatpush3.bf16.msra.mxu0 %v588_v13  ;;  %p628_p8 = scmp.ne.s32.totalorder %s439_s7, %s627_s8  ;;  %p633_p10 = scmp.lt.s32.totalorder %s627_s8, %s627_s8 }
  0x20   :  { %536 = vmatprep.subr.bf16.mxu0 %v656_v0 }
  0x21   :  { %p634_p11 = por %p633_p10, %p632_p9 }
  0x22   :  { %519 = vmatpush3.bf16.msra.mxu1 %v582_v7 }
  0x23   :  { %520 = vmatprep.subr.bf16.mxu1 %v656_v0  ;;  %537 = vmatpush3.bf16.msra.mxu0 %v589_v14  ;;  %p635_p12 = pnand %p634_p11, %p628_p8 }
  0x24   :  { %538 = vmatprep.subr.bf16.mxu0 %v656_v0 }
  0x26   :  { %521 = vmatpush3.bf16.msra.mxu1 %v583_v8 }
  0x27   :  { %522 = vmatprep.subr.bf16.mxu1 %v656_v0  ;;  %539 = vmatpush3.bf16.msra.mxu0 %v590_v15 }
  0x28   :  { %540 = vmatprep.subr.bf16.mxu0 %v656_v0 }
  0x2a   :  { %523 = vmatpush3.bf16.msra.mxu1 %v584_v9 }
  0x2b   :  { %524 = vmatprep.subr.bf16.mxu1 %v656_v0  ;;  %541 = vmatpush3.bf16.msra.mxu0 %v591_v16 }
  0x2c   :  { %542 = vmatprep.subr.bf16.mxu0 %v656_v0 }
  0x2e   :  { %525 = vmatpush3.bf16.msra.mxu1 %v585_v10 }
  0x2f   :  { %526 = vmatprep.subr.bf16.mxu1 %v656_v0  ;;  %543 = vmatpush3.bf16.msra.mxu0 %v592_v17 }
  0x30   :  { %544 = vmatprep.subr.bf16.mxu0 %v656_v0 }
  0x32   :  { %527 = vmatpush3.bf16.msra.mxu1 %v586_v11 }
  0x33   :  { %552 = vmatprep.subr.bf16.mxu1 %v656_v0  ;;  %545 = vmatpush3.bf16.msra.mxu0 %v593_v26 }
  0x34   :  { %546 = vmatprep.subr.bf16.mxu0 %v656_v0 }
  0x37   :  { %547 = vmatpush3.bf16.msra.mxu0 %v594_v27 }
  0xec   :  { %v89_v19 = vpop.f32.mrb[0].mxu0 }
  0xed   :  { %v90_v20 = vadd.f32 %v447_v18, %v89_v19  ;;  %v510_v21 = vpop.f32.mrb[1].mxu0 }
  0xee   :  { %v92_v22 = vpop.f32.mrb[2].mxu0 }
  0xef   :  { %v95_v23 = vmax.f32 %v90_v20, 0.0  ;;  %v511_v24 = vpop.f32.mrb[3].mxu0 }
  0xf1   :  { %v96_v25 = vpack.c.bf16 %v95_v23, %v95_v23 }
  0xf3   :  { %529 = vmatmul.mubr.bf16.vlgmr.msra.gmra.mrb[0].mxu1 %v96_v25 }
  0xf4   :  { %568 = vmatprep.mubr.msk.bf16.mxu1 %vm657_vm0, %v656_v0  ;;  %553 = vmatpush3.bf16.msra.mxu1 %v595_v28 }
  0xf5   :  { %554 = vmatprep.subr.bf16.mxu1 %v656_v0 }
  0xf8   :  { %555 = vmatpush3.bf16.msra.mxu1 %v596_v29 }
  0xf9   :  { %556 = vmatprep.subr.bf16.mxu1 %v656_v0 }
  0xfc   :  { %557 = vmatpush3.bf16.msra.mxu1 %v597_v30 }
  0xfd   :  { %558 = vmatprep.subr.bf16.mxu1 %v656_v0 }
 0x100   :  { %559 = vmatpush3.bf16.msra.mxu1 %v598_v31 }
 0x101   :  { %560 = vmatprep.subr.bf16.mxu1 %v656_v0 }
 0x104   :  { %561 = vmatpush3.bf16.msra.mxu1 %v599_v32 }
 0x105   :  { %562 = vmatprep.subr.bf16.mxu1 %v656_v0 }
 0x108   :  { %563 = vmatpush3.bf16.msra.mxu1 %v600_v33 }
 0x109   :  { %564 = vmatprep.subr.bf16.mxu1 %v656_v0 }
 0x10c   :  { %565 = vmatpush3.bf16.msra.mxu1 %v601_v42 }
 0x10d   :  { %566 = vmatprep.subr.bf16.mxu1 %v656_v0 }
 0x110   :  { %567 = vmatpush3.bf16.msra.mxu1 %v602_v43 }
 0x1c6   :  { %v200_v35 = vpop.f32.mrb[0].mxu1 }
 0x1c7   :  { %v201_v36 = vadd.f32 %v450_v34, %v200_v35  ;;  %v530_v37 = vpop.f32.mrb[1].mxu1 }
 0x1c8   :  { %v203_v38 = vpop.f32.mrb[2].mxu1 }
 0x1c9   :  { %v206_v39 = vmax.f32 %v201_v36, 0.0  ;;  %v531_v40 = vpop.f32.mrb[3].mxu1 }
 0x1cb   :  { %v207_v41 = vpack.c.bf16 %v206_v39, %v206_v39 }
 0x1cd   :  { %549 = vmatmul.mubr.bf16.vlgmr.msra.gmra.mrb[4].mxu0 %v207_v41 }
 0x2a0   :  { %v312_v45 = vpop.f32.mrb[4].mxu0 }
 0x2a1   :  { %v313_v46 = vadd.f32 %v459_v44, %v312_v45  ;;  %v550_v47 = vpop.f32.mrb[5].mxu0 }
 0x2a2   :  { %v315_v48 = vpop.f32.mrb[6].mxu0 }
 0x2a3   :  { %v318_v49 = vmax.f32 %v313_v46, 0.0  ;;  %v551_v50 = vpop.f32.mrb[7].mxu0 }
 0x2a5   :  { %v319_v51 = vpack.c.bf16 %v318_v49, %v318_v49 }
 0x2a7   :  { %569 = vmatmul.mubr.bf16.vlgmr.msra.gmra.mrb[4].mxu1 %v319_v51 }
 0x37a   :  { %v423_v53 = vpop.f32.mrb[4].mxu1 }
 0x37b   :  { %v424_v54 = vadd.f32 %v468_v52, %v423_v53  ;;  %v570_v55 = vpop.f32.mrb[5].mxu1 }
 0x37c   :  { %v426_v56 = vpop.f32.mrb[6].mxu1 }
 0x37d   :  { %603 = vtanh.f32 %v424_v54  ;;  %v571_v57 = vpop.f32.mrb[7].mxu1 }
 0x387   :  { %v604_v58 = vpop.eup %603 }
 0x388   :  { %431 = vst.msk [vmem:[#allocation5] sm:$0xff] %vm430_vm2, %v604_v58 }
 0x389   :  { %638 = shalt.err (!%p635_p12)
}
 0x38a   :  { %s639_s2 = scalar_lea.hbm %s793_s5, 128 }
 0x38b   :  { %p640_p13 = scmp.ne.s32.totalorder %s793_s5, %s639_s2  ;;  %p643_p0 = scmp.lt.u32.totalorder %s639_s2, %s793_s5 }
 0x38d   :  { %p645_p1 = pnand %p643_p0, %p640_p13 }
 0x38f   :  { %648 = shalt.err (!%p645_p1)
}
 0x390   :  { %441 = dma.vmem_to_hbm [thread:$0]  %s439_s7, 128, %s793_s5, [#allocation4]  }
 0x391   :  { %651 = dma.done.wait [#allocation4], 128  }
 0x392   :  { %652 = vsyncadd [#allocation4], 4294967168 }
 0x393   :  { %445 = vsyncpa [#allocation3], 1 }
 0x394   :  { %446 = vsyncpa [#allocation4], 1 }

</bundles_post_ra>
